<compile_context>
chip_gen: v6e
topology: v6e:2x2x1
jax: 0.10.0
libtpu: 0.0.40
codegen_flags: <defaults>
</compile_context>

<pallas_src>
import jax
import jax.numpy as jnp
from jax.experimental import pallas as pl
from jax.experimental.pallas import tpu as pltpu

KSIZE = 7
PAD = 3


def _make_kernel(C, L, b_tile):
    """Build the BlockV2 kernel for a (C, b_tile*L) lane-dense activation tile."""

    def kernel(x_ref, w1_ref, s1_ref, b1_ref, w2_ref, s2_ref, b2_ref,
               fc1w_ref, fc1b_ref, fc2w_ref, fc2b_ref, out_ref):
        # x is both the conv input and the residual (downsample is None, stride=1).
        x = x_ref[...]                                        # (C, BL) f32

        # Position-within-sample for every lane (no integer div/mod needed).
        t_iota = jax.lax.broadcasted_iota(jnp.int32, (C, L), 1)
        t_mod = jnp.concatenate([t_iota] * b_tile, axis=1)    # (C, BL)

        def im2col(v):
            # Pack the 7 conv taps into one (7*C, BL) bf16 matrix.  Shifts are
            # static rolls along the lane axis; lanes whose source would cross a
            # per-sample boundary (i.e. the "same" zero padding) are masked to 0.
            taps = []
            for k in range(KSIZE):
                s = k - PAD                                   # shift in [-3, 3]
                tap = v if s == 0 else jnp.roll(v, -s, axis=1)
                if s < 0:
                    tap = jnp.where(t_mod >= -s, tap, 0.0)
                elif s > 0:
                    tap = jnp.where(t_mod < L - s, tap, 0.0)
                taps.append(tap.astype(jnp.bfloat16))
            return jnp.concatenate(taps, axis=0)              # (7*C, BL) bf16

        # ---- conv1 (k=7, stride=1, pad=3, no bias) as ONE MXU matmul ----
        h = jnp.dot(w1_ref[...], im2col(x), preferred_element_type=jnp.float32)
        h = jnp.maximum(h * s1_ref[...] + b1_ref[...], 0.0)   # bn1 (folded) + relu

        # ---- conv2 + bn2 ----
        g = jnp.dot(w2_ref[...], im2col(h), preferred_element_type=jnp.float32)
        g = g * s2_ref[...] + b2_ref[...]

        # ---- ChannelMask: sigmoid(mlp(avgpool) + mlp(maxpool)), per sample ----
        # Fused: both pools of every sample in the block share one fc1/relu/fc2.
        pools = []
        for b in range(b_tile):
            gb = g[:, b * L:(b + 1) * L]
            pools.append(jnp.mean(gb, axis=1, keepdims=True))
        for b in range(b_tile):
            gb = g[:, b * L:(b + 1) * L]
            pools.append(jnp.max(gb, axis=1, keepdims=True))
        pooled = jnp.concatenate(pools, axis=1)               # (C, 2*b_tile) f32
        hid = jnp.maximum(
            jnp.dot(fc1w_ref[...], pooled, preferred_element_type=jnp.float32)
            + fc1b_ref[...], 0.0)
        y = (jnp.dot(fc2w_ref[...], hid, preferred_element_type=jnp.float32)
             + fc2b_ref[...])                                 # (C, 2*b_tile)
        cm = jax.nn.sigmoid(y[:, :b_tile] + y[:, b_tile:])    # (C, b_tile)

        # Broadcast each sample's (C, 1) channel mask over its own lanes.
        out = jnp.concatenate(
            [cm[:, b:b + 1] * g[:, b * L:(b + 1) * L] for b in range(b_tile)],
            axis=1)                                           # (C, BL)

        # ---- TemporalMask: sigmoid(max over channels) + 1 (batched over lanes) ----
        tm = jax.nn.sigmoid(jnp.max(out, axis=0, keepdims=True)) + 1.0
        out = tm * out + x                                    # temporal mask + residual
        out_ref[...] = out.astype(out_ref.dtype)

    return kernel


def _flatten_conv_weight(w):
    """(Cout, Cin, K) PyTorch Conv1d weight -> (Cout, K*Cin) im2col weight."""
    cout, cin, k = w.shape
    return jnp.transpose(w, (0, 2, 1)).reshape(cout, k * cin)


def _choose_b_tile(N, L):
    """Pick samples-per-grid-step: lane-dense (multiple of 128, >=256 lanes) and
    keep >=2 grid steps so v7x can shard across its two TensorCores."""
    cands = [b for b in range(1, N + 1) if N % b == 0]
    for b in cands:
        if (b * L) % 128 == 0 and b * L >= 256 and N // b >= 2:
            return b
    for b in cands:
        if (b * L) % 128 == 0:
            return b
    return N  # fall back to a full-array block


def _vmem_budget(C, BL, Csq):
    blk = C * BL * 4                           # one f32 (C, BL) tile
    col = KSIZE * C * BL * 2                   # bf16 im2col matrix
    weights = 2 * (C * KSIZE * C * 2) \
        + (Csq * C + C * Csq + 4 * C + 2 * Csq + 2 * C) * 4
    # x / out blocks are double-buffered by the pipeline; leave headroom for the
    # live working tiles (h, g, masks, iotas).  Cap at v7x's 64 MiB physical VMEM.
    need = 2 * 2 * blk + 2 * weights + 2 * col + 8 * blk
    return int(min(64 * 1024 * 1024, max(16 * 1024 * 1024, 2 * need)))


def blockv2_forward(x, p, *, b_tile=None):
    N, C, L = x.shape
    Csq = p["fc1w"].shape[0]
    if b_tile is None:
        b_tile = _choose_b_tile(N, L)
    assert N % b_tile == 0, "batch must be divisible by b_tile"
    BL = b_tile * L
    assert BL % 128 == 0 or b_tile == N, (
        "b_tile*L must be a multiple of 128 (lane-dense blocks) or cover the "
        "whole batch")

    # Layout plumbing (outside the kernel): NCL -> channels-major with the batch
    # folded into the lane axis.  For a full network this layout would be kept
    # end-to-end instead of converting per block.
    x_cl = jnp.transpose(x, (1, 0, 2)).reshape(C, N * L)

    # bf16 MXU operands for the big conv matmuls; SE-branch fc weights stay f32
    # (tiny matmuls, keeps the epilogue accuracy and avoids bf16 VPU work on v5e).
    w1f = _flatten_conv_weight(p["w1"]).astype(jnp.bfloat16)
    w2f = _flatten_conv_weight(p["w2"]).astype(jnp.bfloat16)

    const = lambda i: (0, 0)
    grid_spec = pltpu.PrefetchScalarGridSpec(
        num_scalar_prefetch=0,
        grid=(N // b_tile,),
        in_specs=[
            pl.BlockSpec((C, BL), lambda i: (0, i)),        # x (conv in + residual)
            pl.BlockSpec((C, KSIZE * C), const),            # conv1 weight (im2col, bf16)
            pl.BlockSpec((C, 1), const),                    # bn1 scale
            pl.BlockSpec((C, 1), const),                    # bn1 shift
            pl.BlockSpec((C, KSIZE * C), const),            # conv2 weight (im2col, bf16)
            pl.BlockSpec((C, 1), const),                    # bn2 scale
            pl.BlockSpec((C, 1), const),                    # bn2 shift
            pl.BlockSpec((Csq, C), const),                  # fc1 weight
            pl.BlockSpec((Csq, 1), const),                  # fc1 bias
            pl.BlockSpec((C, Csq), const),                  # fc2 weight
            pl.BlockSpec((C, 1), const),                    # fc2 bias
        ],
        out_specs=pl.BlockSpec((C, BL), lambda i: (0, i)),
    )

    y_cl = pl.pallas_call(
        _make_kernel(C, L, b_tile),
        out_shape=jax.ShapeDtypeStruct((C, N * L), jnp.float32),
        grid_spec=grid_spec,
        compiler_params=pltpu.CompilerParams(
            dimension_semantics=("parallel",),
            vmem_limit_bytes=_vmem_budget(C, BL, Csq)),
    )(x_cl, w1f, p["s1"], p["b1"], w2f, p["s2"], p["b2"],
      p["fc1w"], p["fc1b"], p["fc2w"], p["fc2b"])

    return y_cl.reshape(C, N, L).transpose(1, 0, 2)


def init_params(key, C, ratio=8, eps=1e-5):
    Csq = max(1, C // ratio)
    ks = jax.random.split(key, 8)
    # Conv weights in PyTorch Conv1d layout (Cout, Cin, K).
    w1 = 0.1 * jax.random.normal(ks[0], (C, C, KSIZE), jnp.float32)
    w2 = 0.1 * jax.random.normal(ks[1], (C, C, KSIZE), jnp.float32)

    def bn(k):  # inference-mode BatchNorm folded into per-channel scale/shift
        k1, k2, k3, k4 = jax.random.split(k, 4)
        gamma = 1.0 + 0.1 * jax.random.normal(k1, (C, 1), jnp.float32)
        beta = 0.1 * jax.random.normal(k2, (C, 1), jnp.float32)
        mean = 0.1 * jax.random.normal(k3, (C, 1), jnp.float32)
        var = jax.random.uniform(k4, (C, 1), jnp.float32, minval=0.5, maxval=1.5)
        scale = gamma / jnp.sqrt(var + eps)
        shift = beta - mean * scale
        return scale, shift

    s1, b1 = bn(ks[2])
    s2, b2 = bn(ks[3])
    fc1w = 0.2 * jax.random.normal(ks[4], (Csq, C), jnp.float32)
    fc1b = 0.1 * jax.random.normal(ks[5], (Csq, 1), jnp.float32)
    fc2w = 0.2 * jax.random.normal(ks[6], (C, Csq), jnp.float32)
    fc2b = 0.1 * jax.random.normal(ks[7], (C, 1), jnp.float32)
    return dict(w1=w1, w2=w2, s1=s1, b1=b1, s2=s2, b2=b2,
                fc1w=fc1w, fc1b=fc1b, fc2w=fc2w, fc2b=fc2b)


def ref_forward(x, p):
    """Pure-JAX (f32) reference with identical math (Conv1d k=7, pad=3, stride=1)."""
    L = x.shape[-1]

    def conv7(inp, w):  # w: (Cout, Cin, K)
        ipad = jnp.pad(inp, ((0, 0), (0, 0), (PAD, PAD)))
        return sum(jnp.einsum('oi,nil->nol', w[:, :, k], ipad[:, :, k:k + L])
                   for k in range(KSIZE))

    h = conv7(x, p["w1"])
    h = jnp.maximum(h * p["s1"][None] + p["b1"][None], 0.0)
    g = conv7(h, p["w2"])
    g = g * p["s2"][None] + p["b2"][None]

    avg = jnp.mean(g, axis=2, keepdims=True)
    mx = jnp.max(g, axis=2, keepdims=True)

    def mlp(v):
        hdn = jnp.maximum(
            jnp.einsum('sc,ncl->nsl', p["fc1w"], v) + p["fc1b"][None], 0.0)
        return jnp.einsum('cs,nsl->ncl', p["fc2w"], hdn) + p["fc2b"][None]

    cm = jax.nn.sigmoid(mlp(avg) + mlp(mx))
    out = cm * g
    tm = jax.nn.sigmoid(jnp.max(out, axis=1, keepdims=True)) + 1.0
    out = tm * out
    return out + x


if __name__ == "__main__":
    # Small shapes consistent with the module (stride=1, in_channels==out_channels).
    N, C, L = 4, 16, 128
    key = jax.random.PRNGKey(0)
    kx, kp = jax.random.split(key)
    x = jax.random.normal(kx, (N, C, L), jnp.float32)
    params = init_params(kp, C)

    y = jax.block_until_ready(blockv2_forward(x, params))
    y_ref = ref_forward(x, params)

    err = float(jnp.max(jnp.abs(y - y_ref)))
    scale = float(jnp.max(jnp.abs(y_ref)))
    # Relaxed (relative) tolerance because the conv matmuls use bf16 MXU operands.
    assert err <= 2e-2 * max(scale, 1.0), f"mismatch vs reference: abs={err}, scale={scale}"
    print("KERNEL_OK")
</pallas_src>

<mosaic_0001>
module attributes {stable_mosaic.version = 11 : i64} {
  func.func @kernel(%arg0: i32, %arg1: memref<16x256xf32, #tpu.memory_space<vmem>>, %arg2: memref<16x112xbf16, #tpu.memory_space<vmem>>, %arg3: memref<16x1xf32, #tpu.memory_space<vmem>>, %arg4: memref<16x1xf32, #tpu.memory_space<vmem>>, %arg5: memref<16x112xbf16, #tpu.memory_space<vmem>>, %arg6: memref<16x1xf32, #tpu.memory_space<vmem>>, %arg7: memref<16x1xf32, #tpu.memory_space<vmem>>, %arg8: memref<2x16xf32, #tpu.memory_space<vmem>>, %arg9: memref<2x1xf32, #tpu.memory_space<vmem>>, %arg10: memref<16x2xf32, #tpu.memory_space<vmem>>, %arg11: memref<16x1xf32, #tpu.memory_space<vmem>>, %arg12: memref<16x256xf32, #tpu.memory_space<vmem>>) attributes {dimension_semantics = [#tpu.dimension_semantics<parallel>], iteration_bounds = array<i64: 2>, scalar_prefetch = 0 : i64, scratch_operands = 0 : i64, tpu.core_type = #tpu.core_type<tc>, window_params = [{transform_indices = @transform_0, window_bounds = array<i64: 16, 256>}, {pipeline_mode = #tpu.pipeline_mode<synchronous>, transform_indices = @transform_1, window_bounds = array<i64: 16, 112>}, {pipeline_mode = #tpu.pipeline_mode<synchronous>, transform_indices = @transform_2, window_bounds = array<i64: 16, 1>}, {pipeline_mode = #tpu.pipeline_mode<synchronous>, transform_indices = @transform_3, window_bounds = array<i64: 16, 1>}, {pipeline_mode = #tpu.pipeline_mode<synchronous>, transform_indices = @transform_4, window_bounds = array<i64: 16, 112>}, {pipeline_mode = #tpu.pipeline_mode<synchronous>, transform_indices = @transform_5, window_bounds = array<i64: 16, 1>}, {pipeline_mode = #tpu.pipeline_mode<synchronous>, transform_indices = @transform_6, window_bounds = array<i64: 16, 1>}, {pipeline_mode = #tpu.pipeline_mode<synchronous>, transform_indices = @transform_7, window_bounds = array<i64: 2, 16>}, {pipeline_mode = #tpu.pipeline_mode<synchronous>, transform_indices = @transform_8, window_bounds = array<i64: 2, 1>}, {pipeline_mode = #tpu.pipeline_mode<synchronous>, transform_indices = @transform_9, window_bounds = array<i64: 16, 2>}, {pipeline_mode = #tpu.pipeline_mode<synchronous>, transform_indices = @transform_10, window_bounds = array<i64: 16, 1>}, {transform_indices = @transform_11, window_bounds = array<i64: 16, 256>}]} {
    %c0 = arith.constant 0 : index
    %c0_0 = arith.constant 0 : index
    %0 = vector.load %arg1[%c0, %c0_0] : memref<16x256xf32, #tpu.memory_space<vmem>>, vector<16x256xf32>
    %1 = tpu.iota {dimensions = array<i32: 1>} : vector<16x128xi32>
    %2 = tpu.concatenate %1, %1 in 1 : vector<16x128xi32>, vector<16x128xi32> -> vector<16x256xi32>
    %c0_1 = arith.constant 0 : index
    %c0_2 = arith.constant 0 : index
    %3 = vector.load %arg2[%c0_1, %c0_2] : memref<16x112xbf16, #tpu.memory_space<vmem>>, vector<16x112xbf16>
    %4 = vector.extract_strided_slice %0 {offsets = [0, 253], sizes = [16, 3], strides = [1, 1]} : vector<16x256xf32> to vector<16x3xf32>
    %5 = vector.extract_strided_slice %0 {offsets = [0, 0], sizes = [16, 253], strides = [1, 1]} : vector<16x256xf32> to vector<16x253xf32>
    %6 = tpu.concatenate %4, %5 in 1 : vector<16x3xf32>, vector<16x253xf32> -> vector<16x256xf32>
    %c3_i32 = arith.constant 3 : i32
    %7 = vector.broadcast %c3_i32 : i32 to vector<16x256xi32>
    %8 = arith.cmpi sge, %2, %7 : vector<16x256xi32>
    %cst = arith.constant 0.000000e+00 : f32
    %9 = vector.broadcast %cst : f32 to vector<16x256xf32>
    %10 = arith.select %8, %6, %9 : vector<16x256xi1>, vector<16x256xf32>
    %11 = arith.truncf %10 : vector<16x256xf32> to vector<16x256xbf16>
    %12 = vector.extract_strided_slice %0 {offsets = [0, 254], sizes = [16, 2], strides = [1, 1]} : vector<16x256xf32> to vector<16x2xf32>
    %13 = vector.extract_strided_slice %0 {offsets = [0, 0], sizes = [16, 254], strides = [1, 1]} : vector<16x256xf32> to vector<16x254xf32>
    %14 = tpu.concatenate %12, %13 in 1 : vector<16x2xf32>, vector<16x254xf32> -> vector<16x256xf32>
    %c2_i32 = arith.constant 2 : i32
    %15 = vector.broadcast %c2_i32 : i32 to vector<16x256xi32>
    %16 = arith.cmpi sge, %2, %15 : vector<16x256xi32>
    %cst_3 = arith.constant 0.000000e+00 : f32
    %17 = vector.broadcast %cst_3 : f32 to vector<16x256xf32>
    %18 = arith.select %16, %14, %17 : vector<16x256xi1>, vector<16x256xf32>
    %19 = arith.truncf %18 : vector<16x256xf32> to vector<16x256xbf16>
    %20 = vector.extract_strided_slice %0 {offsets = [0, 255], sizes = [16, 1], strides = [1, 1]} : vector<16x256xf32> to vector<16x1xf32>
    %21 = vector.extract_strided_slice %0 {offsets = [0, 0], sizes = [16, 255], strides = [1, 1]} : vector<16x256xf32> to vector<16x255xf32>
    %22 = tpu.concatenate %20, %21 in 1 : vector<16x1xf32>, vector<16x255xf32> -> vector<16x256xf32>
    %c1_i32 = arith.constant 1 : i32
    %23 = vector.broadcast %c1_i32 : i32 to vector<16x256xi32>
    %24 = arith.cmpi sge, %2, %23 : vector<16x256xi32>
    %cst_4 = arith.constant 0.000000e+00 : f32
    %25 = vector.broadcast %cst_4 : f32 to vector<16x256xf32>
    %26 = arith.select %24, %22, %25 : vector<16x256xi1>, vector<16x256xf32>
    %27 = arith.truncf %26 : vector<16x256xf32> to vector<16x256xbf16>
    %28 = arith.truncf %0 : vector<16x256xf32> to vector<16x256xbf16>
    %29 = vector.extract_strided_slice %0 {offsets = [0, 1], sizes = [16, 255], strides = [1, 1]} : vector<16x256xf32> to vector<16x255xf32>
    %30 = vector.extract_strided_slice %0 {offsets = [0, 0], sizes = [16, 1], strides = [1, 1]} : vector<16x256xf32> to vector<16x1xf32>
    %31 = tpu.concatenate %29, %30 in 1 : vector<16x255xf32>, vector<16x1xf32> -> vector<16x256xf32>
    %c127_i32 = arith.constant 127 : i32
    %32 = vector.broadcast %c127_i32 : i32 to vector<16x256xi32>
    %33 = arith.cmpi slt, %2, %32 : vector<16x256xi32>
    %cst_5 = arith.constant 0.000000e+00 : f32
    %34 = vector.broadcast %cst_5 : f32 to vector<16x256xf32>
    %35 = arith.select %33, %31, %34 : vector<16x256xi1>, vector<16x256xf32>
    %36 = arith.truncf %35 : vector<16x256xf32> to vector<16x256xbf16>
    %37 = vector.extract_strided_slice %0 {offsets = [0, 2], sizes = [16, 254], strides = [1, 1]} : vector<16x256xf32> to vector<16x254xf32>
    %38 = vector.extract_strided_slice %0 {offsets = [0, 0], sizes = [16, 2], strides = [1, 1]} : vector<16x256xf32> to vector<16x2xf32>
    %39 = tpu.concatenate %37, %38 in 1 : vector<16x254xf32>, vector<16x2xf32> -> vector<16x256xf32>
    %c126_i32 = arith.constant 126 : i32
    %40 = vector.broadcast %c126_i32 : i32 to vector<16x256xi32>
    %41 = arith.cmpi slt, %2, %40 : vector<16x256xi32>
    %cst_6 = arith.constant 0.000000e+00 : f32
    %42 = vector.broadcast %cst_6 : f32 to vector<16x256xf32>
    %43 = arith.select %41, %39, %42 : vector<16x256xi1>, vector<16x256xf32>
    %44 = arith.truncf %43 : vector<16x256xf32> to vector<16x256xbf16>
    %45 = vector.extract_strided_slice %0 {offsets = [0, 3], sizes = [16, 253], strides = [1, 1]} : vector<16x256xf32> to vector<16x253xf32>
    %46 = vector.extract_strided_slice %0 {offsets = [0, 0], sizes = [16, 3], strides = [1, 1]} : vector<16x256xf32> to vector<16x3xf32>
    %47 = tpu.concatenate %45, %46 in 1 : vector<16x253xf32>, vector<16x3xf32> -> vector<16x256xf32>
    %c125_i32 = arith.constant 125 : i32
    %48 = vector.broadcast %c125_i32 : i32 to vector<16x256xi32>
    %49 = arith.cmpi slt, %2, %48 : vector<16x256xi32>
    %cst_7 = arith.constant 0.000000e+00 : f32
    %50 = vector.broadcast %cst_7 : f32 to vector<16x256xf32>
    %51 = arith.select %49, %47, %50 : vector<16x256xi1>, vector<16x256xf32>
    %52 = arith.truncf %51 : vector<16x256xf32> to vector<16x256xbf16>
    %53 = tpu.concatenate %11, %19, %27, %28, %36, %44, %52 in 0 : vector<16x256xbf16>, vector<16x256xbf16>, vector<16x256xbf16>, vector<16x256xbf16>, vector<16x256xbf16>, vector<16x256xbf16>, vector<16x256xbf16> -> vector<112x256xbf16>
    %cst_8 = arith.constant dense<0.000000e+00> : vector<16x256xf32>
    %54 = tpu.matmul %3, %53, %cst_8 {dimension_numbers = #tpu.dot_dimension_numbers<[1], [0], [0], [1], [0, 0, 1, 1], [], []>} : vector<16x112xbf16>, vector<112x256xbf16>, vector<16x256xf32> -> vector<16x256xf32>
    %c0_9 = arith.constant 0 : index
    %c0_10 = arith.constant 0 : index
    %55 = vector.load %arg3[%c0_9, %c0_10] : memref<16x1xf32, #tpu.memory_space<vmem>>, vector<16x1xf32>
    %56 = vector.broadcast %55 : vector<16x1xf32> to vector<16x256xf32>
    %57 = arith.mulf %54, %56 : vector<16x256xf32>
    %c0_11 = arith.constant 0 : index
    %c0_12 = arith.constant 0 : index
    %58 = vector.load %arg4[%c0_11, %c0_12] : memref<16x1xf32, #tpu.memory_space<vmem>>, vector<16x1xf32>
    %59 = vector.broadcast %58 : vector<16x1xf32> to vector<16x256xf32>
    %60 = arith.addf %57, %59 : vector<16x256xf32>
    %cst_13 = arith.constant 0.000000e+00 : f32
    %61 = vector.broadcast %cst_13 : f32 to vector<16x256xf32>
    %62 = arith.maximumf %60, %61 : vector<16x256xf32>
    %c0_14 = arith.constant 0 : index
    %c0_15 = arith.constant 0 : index
    %63 = vector.load %arg5[%c0_14, %c0_15] : memref<16x112xbf16, #tpu.memory_space<vmem>>, vector<16x112xbf16>
    %64 = vector.extract_strided_slice %62 {offsets = [0, 253], sizes = [16, 3], strides = [1, 1]} : vector<16x256xf32> to vector<16x3xf32>
    %65 = vector.extract_strided_slice %62 {offsets = [0, 0], sizes = [16, 253], strides = [1, 1]} : vector<16x256xf32> to vector<16x253xf32>
    %66 = tpu.concatenate %64, %65 in 1 : vector<16x3xf32>, vector<16x253xf32> -> vector<16x256xf32>
    %c3_i32_16 = arith.constant 3 : i32
    %67 = vector.broadcast %c3_i32_16 : i32 to vector<16x256xi32>
    %68 = arith.cmpi sge, %2, %67 : vector<16x256xi32>
    %cst_17 = arith.constant 0.000000e+00 : f32
    %69 = vector.broadcast %cst_17 : f32 to vector<16x256xf32>
    %70 = arith.select %68, %66, %69 : vector<16x256xi1>, vector<16x256xf32>
    %71 = arith.truncf %70 : vector<16x256xf32> to vector<16x256xbf16>
    %72 = vector.extract_strided_slice %62 {offsets = [0, 254], sizes = [16, 2], strides = [1, 1]} : vector<16x256xf32> to vector<16x2xf32>
    %73 = vector.extract_strided_slice %62 {offsets = [0, 0], sizes = [16, 254], strides = [1, 1]} : vector<16x256xf32> to vector<16x254xf32>
    %74 = tpu.concatenate %72, %73 in 1 : vector<16x2xf32>, vector<16x254xf32> -> vector<16x256xf32>
    %c2_i32_18 = arith.constant 2 : i32
    %75 = vector.broadcast %c2_i32_18 : i32 to vector<16x256xi32>
    %76 = arith.cmpi sge, %2, %75 : vector<16x256xi32>
    %cst_19 = arith.constant 0.000000e+00 : f32
    %77 = vector.broadcast %cst_19 : f32 to vector<16x256xf32>
    %78 = arith.select %76, %74, %77 : vector<16x256xi1>, vector<16x256xf32>
    %79 = arith.truncf %78 : vector<16x256xf32> to vector<16x256xbf16>
    %80 = vector.extract_strided_slice %62 {offsets = [0, 255], sizes = [16, 1], strides = [1, 1]} : vector<16x256xf32> to vector<16x1xf32>
    %81 = vector.extract_strided_slice %62 {offsets = [0, 0], sizes = [16, 255], strides = [1, 1]} : vector<16x256xf32> to vector<16x255xf32>
    %82 = tpu.concatenate %80, %81 in 1 : vector<16x1xf32>, vector<16x255xf32> -> vector<16x256xf32>
    %c1_i32_20 = arith.constant 1 : i32
    %83 = vector.broadcast %c1_i32_20 : i32 to vector<16x256xi32>
    %84 = arith.cmpi sge, %2, %83 : vector<16x256xi32>
    %cst_21 = arith.constant 0.000000e+00 : f32
    %85 = vector.broadcast %cst_21 : f32 to vector<16x256xf32>
    %86 = arith.select %84, %82, %85 : vector<16x256xi1>, vector<16x256xf32>
    %87 = arith.truncf %86 : vector<16x256xf32> to vector<16x256xbf16>
    %88 = arith.truncf %62 : vector<16x256xf32> to vector<16x256xbf16>
    %89 = vector.extract_strided_slice %62 {offsets = [0, 1], sizes = [16, 255], strides = [1, 1]} : vector<16x256xf32> to vector<16x255xf32>
    %90 = vector.extract_strided_slice %62 {offsets = [0, 0], sizes = [16, 1], strides = [1, 1]} : vector<16x256xf32> to vector<16x1xf32>
    %91 = tpu.concatenate %89, %90 in 1 : vector<16x255xf32>, vector<16x1xf32> -> vector<16x256xf32>
    %c127_i32_22 = arith.constant 127 : i32
    %92 = vector.broadcast %c127_i32_22 : i32 to vector<16x256xi32>
    %93 = arith.cmpi slt, %2, %92 : vector<16x256xi32>
    %cst_23 = arith.constant 0.000000e+00 : f32
    %94 = vector.broadcast %cst_23 : f32 to vector<16x256xf32>
    %95 = arith.select %93, %91, %94 : vector<16x256xi1>, vector<16x256xf32>
    %96 = arith.truncf %95 : vector<16x256xf32> to vector<16x256xbf16>
    %97 = vector.extract_strided_slice %62 {offsets = [0, 2], sizes = [16, 254], strides = [1, 1]} : vector<16x256xf32> to vector<16x254xf32>
    %98 = vector.extract_strided_slice %62 {offsets = [0, 0], sizes = [16, 2], strides = [1, 1]} : vector<16x256xf32> to vector<16x2xf32>
    %99 = tpu.concatenate %97, %98 in 1 : vector<16x254xf32>, vector<16x2xf32> -> vector<16x256xf32>
    %c126_i32_24 = arith.constant 126 : i32
    %100 = vector.broadcast %c126_i32_24 : i32 to vector<16x256xi32>
    %101 = arith.cmpi slt, %2, %100 : vector<16x256xi32>
    %cst_25 = arith.constant 0.000000e+00 : f32
    %102 = vector.broadcast %cst_25 : f32 to vector<16x256xf32>
    %103 = arith.select %101, %99, %102 : vector<16x256xi1>, vector<16x256xf32>
    %104 = arith.truncf %103 : vector<16x256xf32> to vector<16x256xbf16>
    %105 = vector.extract_strided_slice %62 {offsets = [0, 3], sizes = [16, 253], strides = [1, 1]} : vector<16x256xf32> to vector<16x253xf32>
    %106 = vector.extract_strided_slice %62 {offsets = [0, 0], sizes = [16, 3], strides = [1, 1]} : vector<16x256xf32> to vector<16x3xf32>
    %107 = tpu.concatenate %105, %106 in 1 : vector<16x253xf32>, vector<16x3xf32> -> vector<16x256xf32>
    %c125_i32_26 = arith.constant 125 : i32
    %108 = vector.broadcast %c125_i32_26 : i32 to vector<16x256xi32>
    %109 = arith.cmpi slt, %2, %108 : vector<16x256xi32>
    %cst_27 = arith.constant 0.000000e+00 : f32
    %110 = vector.broadcast %cst_27 : f32 to vector<16x256xf32>
    %111 = arith.select %109, %107, %110 : vector<16x256xi1>, vector<16x256xf32>
    %112 = arith.truncf %111 : vector<16x256xf32> to vector<16x256xbf16>
    %113 = tpu.concatenate %71, %79, %87, %88, %96, %104, %112 in 0 : vector<16x256xbf16>, vector<16x256xbf16>, vector<16x256xbf16>, vector<16x256xbf16>, vector<16x256xbf16>, vector<16x256xbf16>, vector<16x256xbf16> -> vector<112x256xbf16>
    %cst_28 = arith.constant dense<0.000000e+00> : vector<16x256xf32>
    %114 = tpu.matmul %63, %113, %cst_28 {dimension_numbers = #tpu.dot_dimension_numbers<[1], [0], [0], [1], [0, 0, 1, 1], [], []>} : vector<16x112xbf16>, vector<112x256xbf16>, vector<16x256xf32> -> vector<16x256xf32>
    %c0_29 = arith.constant 0 : index
    %c0_30 = arith.constant 0 : index
    %115 = vector.load %arg6[%c0_29, %c0_30] : memref<16x1xf32, #tpu.memory_space<vmem>>, vector<16x1xf32>
    %116 = vector.broadcast %115 : vector<16x1xf32> to vector<16x256xf32>
    %117 = arith.mulf %114, %116 : vector<16x256xf32>
    %c0_31 = arith.constant 0 : index
    %c0_32 = arith.constant 0 : index
    %118 = vector.load %arg7[%c0_31, %c0_32] : memref<16x1xf32, #tpu.memory_space<vmem>>, vector<16x1xf32>
    %119 = vector.broadcast %118 : vector<16x1xf32> to vector<16x256xf32>
    %120 = arith.addf %117, %119 : vector<16x256xf32>
    %121 = vector.extract_strided_slice %120 {offsets = [0, 0], sizes = [16, 128], strides = [1, 1]} : vector<16x256xf32> to vector<16x128xf32>
    %cst_33 = arith.constant dense<0.000000e+00> : vector<16xf32>
    %122 = vector.multi_reduction <add>, %121, %cst_33 [1] : vector<16x128xf32> to vector<16xf32>
    %123 = vector.shape_cast %122 : vector<16xf32> to vector<16x1xf32>
    %cst_34 = arith.constant 1.280000e+02 : f32
    %124 = vector.broadcast %cst_34 : f32 to vector<16x1xf32>
    %125 = arith.divf %123, %124 : vector<16x1xf32>
    %126 = vector.extract_strided_slice %120 {offsets = [0, 128], sizes = [16, 128], strides = [1, 1]} : vector<16x256xf32> to vector<16x128xf32>
    %cst_35 = arith.constant dense<0.000000e+00> : vector<16xf32>
    %127 = vector.multi_reduction <add>, %126, %cst_35 [1] : vector<16x128xf32> to vector<16xf32>
    %128 = vector.shape_cast %127 : vector<16xf32> to vector<16x1xf32>
    %cst_36 = arith.constant 1.280000e+02 : f32
    %129 = vector.broadcast %cst_36 : f32 to vector<16x1xf32>
    %130 = arith.divf %128, %129 : vector<16x1xf32>
    %131 = vector.extract_strided_slice %120 {offsets = [0, 0], sizes = [16, 128], strides = [1, 1]} : vector<16x256xf32> to vector<16x128xf32>
    %cst_37 = arith.constant dense<0xFF800000> : vector<16xf32>
    %132 = vector.multi_reduction <maximumf>, %131, %cst_37 [1] : vector<16x128xf32> to vector<16xf32>
    %133 = vector.shape_cast %132 : vector<16xf32> to vector<16x1xf32>
    %134 = vector.extract_strided_slice %120 {offsets = [0, 128], sizes = [16, 128], strides = [1, 1]} : vector<16x256xf32> to vector<16x128xf32>
    %cst_38 = arith.constant dense<0xFF800000> : vector<16xf32>
    %135 = vector.multi_reduction <maximumf>, %134, %cst_38 [1] : vector<16x128xf32> to vector<16xf32>
    %136 = vector.shape_cast %135 : vector<16xf32> to vector<16x1xf32>
    %137 = tpu.concatenate %125, %130, %133, %136 in 1 : vector<16x1xf32>, vector<16x1xf32>, vector<16x1xf32>, vector<16x1xf32> -> vector<16x4xf32>
    %c0_39 = arith.constant 0 : index
    %c0_40 = arith.constant 0 : index
    %138 = vector.load %arg8[%c0_39, %c0_40] : memref<2x16xf32, #tpu.memory_space<vmem>>, vector<2x16xf32>
    %cst_41 = arith.constant dense<0.000000e+00> : vector<2x4xf32>
    %139 = tpu.matmul %138, %137, %cst_41 {dimension_numbers = #tpu.dot_dimension_numbers<[1], [0], [0], [1], [0, 0, 1, 1], [], []>} : vector<2x16xf32>, vector<16x4xf32>, vector<2x4xf32> -> vector<2x4xf32>
    %c0_42 = arith.constant 0 : index
    %c0_43 = arith.constant 0 : index
    %140 = vector.load %arg9[%c0_42, %c0_43] : memref<2x1xf32, #tpu.memory_space<vmem>>, vector<2x1xf32>
    %141 = vector.broadcast %140 : vector<2x1xf32> to vector<2x4xf32>
    %142 = arith.addf %139, %141 : vector<2x4xf32>
    %cst_44 = arith.constant 0.000000e+00 : f32
    %143 = vector.broadcast %cst_44 : f32 to vector<2x4xf32>
    %144 = arith.maximumf %142, %143 : vector<2x4xf32>
    %c0_45 = arith.constant 0 : index
    %c0_46 = arith.constant 0 : index
    %145 = vector.load %arg10[%c0_45, %c0_46] : memref<16x2xf32, #tpu.memory_space<vmem>>, vector<16x2xf32>
    %cst_47 = arith.constant dense<0.000000e+00> : vector<16x4xf32>
    %146 = tpu.matmul %145, %144, %cst_47 {dimension_numbers = #tpu.dot_dimension_numbers<[1], [0], [0], [1], [0, 0, 1, 1], [], []>} : vector<16x2xf32>, vector<2x4xf32>, vector<16x4xf32> -> vector<16x4xf32>
    %c0_48 = arith.constant 0 : index
    %c0_49 = arith.constant 0 : index
    %147 = vector.load %arg11[%c0_48, %c0_49] : memref<16x1xf32, #tpu.memory_space<vmem>>, vector<16x1xf32>
    %148 = vector.broadcast %147 : vector<16x1xf32> to vector<16x4xf32>
    %149 = arith.addf %146, %148 : vector<16x4xf32>
    %150 = vector.extract_strided_slice %149 {offsets = [0, 0], sizes = [16, 2], strides = [1, 1]} : vector<16x4xf32> to vector<16x2xf32>
    %151 = vector.extract_strided_slice %149 {offsets = [0, 2], sizes = [16, 2], strides = [1, 1]} : vector<16x4xf32> to vector<16x2xf32>
    %152 = arith.addf %150, %151 : vector<16x2xf32>
    %153 = arith.negf %152 : vector<16x2xf32>
    %154 = math.exp %153 : vector<16x2xf32>
    %cst_50 = arith.constant 1.000000e+00 : f32
    %155 = vector.broadcast %cst_50 : f32 to vector<16x2xf32>
    %156 = arith.addf %155, %154 : vector<16x2xf32>
    %157 = arith.divf %155, %156 : vector<16x2xf32>
    %158 = vector.extract_strided_slice %157 {offsets = [0, 0], sizes = [16, 1], strides = [1, 1]} : vector<16x2xf32> to vector<16x1xf32>
    %159 = vector.extract_strided_slice %120 {offsets = [0, 0], sizes = [16, 128], strides = [1, 1]} : vector<16x256xf32> to vector<16x128xf32>
    %160 = vector.broadcast %158 : vector<16x1xf32> to vector<16x128xf32>
    %161 = arith.mulf %160, %159 : vector<16x128xf32>
    %162 = vector.extract_strided_slice %157 {offsets = [0, 1], sizes = [16, 1], strides = [1, 1]} : vector<16x2xf32> to vector<16x1xf32>
    %163 = vector.extract_strided_slice %120 {offsets = [0, 128], sizes = [16, 128], strides = [1, 1]} : vector<16x256xf32> to vector<16x128xf32>
    %164 = vector.broadcast %162 : vector<16x1xf32> to vector<16x128xf32>
    %165 = arith.mulf %164, %163 : vector<16x128xf32>
    %166 = tpu.concatenate %161, %165 in 1 : vector<16x128xf32>, vector<16x128xf32> -> vector<16x256xf32>
    %cst_51 = arith.constant dense<0xFF800000> : vector<256xf32>
    %167 = vector.multi_reduction <maximumf>, %166, %cst_51 [0] : vector<16x256xf32> to vector<256xf32>
    %168 = vector.shape_cast %167 : vector<256xf32> to vector<1x256xf32>
    %169 = arith.negf %168 : vector<1x256xf32>
    %170 = math.exp %169 : vector<1x256xf32>
    %cst_52 = arith.constant 1.000000e+00 : f32
    %171 = vector.broadcast %cst_52 : f32 to vector<1x256xf32>
    %172 = arith.addf %171, %170 : vector<1x256xf32>
    %173 = arith.divf %171, %172 : vector<1x256xf32>
    %cst_53 = arith.constant 1.000000e+00 : f32
    %174 = vector.broadcast %cst_53 : f32 to vector<1x256xf32>
    %175 = arith.addf %173, %174 : vector<1x256xf32>
    %176 = vector.broadcast %175 : vector<1x256xf32> to vector<16x256xf32>
    %177 = arith.mulf %176, %166 : vector<16x256xf32>
    %178 = arith.addf %177, %0 : vector<16x256xf32>
    %c0_54 = arith.constant 0 : index
    %c0_55 = arith.constant 0 : index
    %179 = vector.load %arg12[%c0_54, %c0_55] : memref<16x256xf32, #tpu.memory_space<vmem>>, vector<16x256xf32>
    tpu.vector_store %arg12[%c0_54, %c0_55], %178 {strides = array<i32>} : memref<16x256xf32, #tpu.memory_space<vmem>>, vector<16x256xf32>,
    return
  }
  func.func @transform_0(%arg0: i32) -> (i32, i32) {
    %c0_i32 = arith.constant 0 : i32
    %c0_i32_0 = arith.constant 0 : i32
    return %c0_i32, %arg0 : i32, i32
  }
  func.func @transform_1(%arg0: i32) -> (i32, i32) {
    %c0_i32 = arith.constant 0 : i32
    %c0_i32_0 = arith.constant 0 : i32
    %c0_i32_1 = arith.constant 0 : i32
    return %c0_i32, %c0_i32_0 : i32, i32
  }
  func.func @transform_2(%arg0: i32) -> (i32, i32) {
    %c0_i32 = arith.constant 0 : i32
    %c0_i32_0 = arith.constant 0 : i32
    %c0_i32_1 = arith.constant 0 : i32
    return %c0_i32, %c0_i32_0 : i32, i32
  }
  func.func @transform_3(%arg0: i32) -> (i32, i32) {
    %c0_i32 = arith.constant 0 : i32
    %c0_i32_0 = arith.constant 0 : i32
    %c0_i32_1 = arith.constant 0 : i32
    return %c0_i32, %c0_i32_0 : i32, i32
  }
  func.func @transform_4(%arg0: i32) -> (i32, i32) {
    %c0_i32 = arith.constant 0 : i32
    %c0_i32_0 = arith.constant 0 : i32
    %c0_i32_1 = arith.constant 0 : i32
    return %c0_i32, %c0_i32_0 : i32, i32
  }
  func.func @transform_5(%arg0: i32) -> (i32, i32) {
    %c0_i32 = arith.constant 0 : i32
    %c0_i32_0 = arith.constant 0 : i32
    %c0_i32_1 = arith.constant 0 : i32
    return %c0_i32, %c0_i32_0 : i32, i32
  }
  func.func @transform_6(%arg0: i32) -> (i32, i32) {
    %c0_i32 = arith.constant 0 : i32
    %c0_i32_0 = arith.constant 0 : i32
    %c0_i32_1 = arith.constant 0 : i32
    return %c0_i32, %c0_i32_0 : i32, i32
  }
  func.func @transform_7(%arg0: i32) -> (i32, i32) {
    %c0_i32 = arith.constant 0 : i32
    %c0_i32_0 = arith.constant 0 : i32
    %c0_i32_1 = arith.constant 0 : i32
    return %c0_i32, %c0_i32_0 : i32, i32
  }
  func.func @transform_8(%arg0: i32) -> (i32, i32) {
    %c0_i32 = arith.constant 0 : i32
    %c0_i32_0 = arith.constant 0 : i32
    %c0_i32_1 = arith.constant 0 : i32
    return %c0_i32, %c0_i32_0 : i32, i32
  }
  func.func @transform_9(%arg0: i32) -> (i32, i32) {
    %c0_i32 = arith.constant 0 : i32
    %c0_i32_0 = arith.constant 0 : i32
    %c0_i32_1 = arith.constant 0 : i32
    return %c0_i32, %c0_i32_0 : i32, i32
  }
  func.func @transform_10(%arg0: i32) -> (i32, i32) {
    %c0_i32 = arith.constant 0 : i32
    %c0_i32_0 = arith.constant 0 : i32
    %c0_i32_1 = arith.constant 0 : i32
    return %c0_i32, %c0_i32_0 : i32, i32
  }
  func.func @transform_11(%arg0: i32) -> (i32, i32) {
    %c0_i32 = arith.constant 0 : i32
    %c0_i32_0 = arith.constant 0 : i32
    return %c0_i32, %arg0 : i32, i32
  }
}

</mosaic_0001>

<bundles_post_ra>
// kernel: tpu_custom_call.1
= control target key start
LH: loop header
LB: loop body
LE: loop exit
PB: predicated region body
PF: predicated region fallthrough
CT: control target
= control target key end

     0   :  { %s2129_s0 = inlined_call_operand.vmem [shape: f32[16,512], index: 0, kind: input, shape index: {}]   ;;  %s2130_s1 = inlined_call_operand.vmem [shape: bf16[16,112], index: 1, kind: input, shape index: {}]   ;;  %s2131_s2 = inlined_call_operand.vmem [shape: f32[16,1], index: 2, kind: input, shape index: {}]   ;;  %s2132_s3 = inlined_call_operand.vmem [shape: f32[16,1], index: 3, kind: input, shape index: {}]   ;;  %s2133_s4 = inlined_call_operand.vmem [shape: bf16[16,112], index: 4, kind: input, shape index: {}]   ;;  %s2134_s5 = inlined_call_operand.vmem [shape: f32[16,1], index: 5, kind: input, shape index: {}]   ;;  %s2135_s6 = inlined_call_operand.vmem [shape: f32[16,1], index: 6, kind: input, shape index: {}]   ;;  %s2136_s7 = inlined_call_operand.vmem [shape: f32[2,16], index: 7, kind: input, shape index: {}]   ;;  %s2137_s8 = inlined_call_operand.vmem [shape: f32[2,1], index: 8, kind: input, shape index: {}]   ;;  %s2138_s9 = inlined_call_operand.vmem [shape: f32[16,2], index: 9, kind: input, shape index: {}]   ;;  %s2139_s10 = inlined_call_operand.vmem [shape: f32[16,1], index: 10, kind: input, shape index: {}]   ;;  %s2140_s11 = inlined_call_operand.hbm [shape: f32[16,512], index: 11, kind: output, shape index: {}]  }
   0x1   :  { %2153 = sst [smem:[#allocation6_spill]] %s2129_s0 }
   0x2   :  { %16 = vsyncpa [#allocation4], 0 }
   0x3   :  { %18 = vsyncpa [#allocation4 + $0x1], 0  ;;  %s1729_s17 = smov 0   ;;  %s1731_s18 = smov 0  }
   0x4   :  { %s1733_s19 = smov 0   ;;  %s1735_s20 = smov 0  }
   0x5 LB: > { %s2142_s21 = sadd.s32 4294967295, %s1653_s20   ;;  %s1281_s22 = sadd.s32 4294967294, %s1653_s20   ;;  %s1653_s20 = sphi %s1735_s20, %s2179_s20   ;;  %s1649_s19 = sphi %s1733_s19, %s2178_s19   ;;  %s1645_s18 = sphi %s1731_s18, %s2177_s18   ;;  %s1641_s17 = sphi %s1729_s17, %s2176_s17  }
   0x6   : > { %s1752_s23 = sadd.s32 1, %s1653_s20   ;;  %s31_s24 = sadd.s32 1, %s1649_s19 }
   0x7   : > { %s28_s25 = ssub.s32 %s1653_s20, %s1752_s23  ;;  %p38_p0 = scmp.ne.s32.totalorder %s1649_s19, %s1645_s18 }
   0x8   : > { %p29_p1 = scmp.eq.s32.totalorder %s28_s25, 0  ;;  %p39_p2 = scmp.eq.s32.totalorder %s1653_s20, 0 }
   0x9   : > { %p278_p3 = scmp.eq.s32.totalorder %s2142_s21, 1  ;;  %p283_p4 = scmp.ne.s32.totalorder %s1645_s18, %s1641_s17 }
   0xa   : > { %s1765_s26 = scalar_select %p29_p1, %s1649_s19, %s31_s24  }
   0xb   : > { %p40_p5 = por %p39_p2, %p38_p0  ;;  %p1767_p6 = por %p278_p3, %p38_p0 }
   0xc   : > { %p284_p7 = scmp.eq.s32.totalorder %s1281_s22, 1  ;;  %p1283_p9 = scmp.ge.s32.totalorder %s1653_s20, 2 }
   0xe   : > { %p1771_p8 = por %p284_p7, %p283_p4  ;;  %330 = sbr.rel (%p1283_p9) target bundleno = 31 (0x1f), region = 56 }
  0x13   : > { %333 = sbr.rel (!%p40_p5) target bundleno = 31 (0x1f), region = 60  ;;  %s335_s29 = sand.u32 (%p40_p5), 1, %s1649_s19  }
  0x14   : > { %s1379_s30 = sshll.u32 (%p40_p5), %s1653_s20, 4  ;;  %s1284_s12 = sshll.u32 (%p40_p5), %s335_s29, 5 }
  0x15   : > { %s2156_s0 = sld [smem:[#allocation6_spill]] (%p40_p5)  ;;  %s337_s16 = scalar_lea.vmem (%p40_p5), [#allocation2], %s1284_s12 }
  0x1b   : > { %s340_s15 = scalar_lea.vmem %s2156_s0, %s1379_s30 }
  0x1c   : > { %v353_v0 = vld [vmem:[%s340_s15] sm:$0xff]  ;;  %v355_v1 = vld [vmem:[%s340_s15 + $0x8] sm:$0xff] }
  0x1d   : > { %v357_v2 = vld [vmem:[%s340_s15 + $0x20] sm:$0xff]  ;;  %354 = vst [vmem:[%s337_s16] sm:$0xff] %v353_v0  ;;  %356 = vst [vmem:[%s337_s16 + $0x8] sm:$0xff] %v355_v1  ;;  %v359_v3 = vld [vmem:[%s340_s15 + $0x28] sm:$0xff] }
  0x1e   : > { %358 = vst [vmem:[%s337_s16 + $0x10] sm:$0xff] %v357_v2  ;;  %360 = vst [vmem:[%s337_s16 + $0x18] sm:$0xff] %v359_v3 }
  0x1f PF: > { %p1287_p10 = scmp.ge.s32.totalorder %s1653_s20, 1  ;;  %p365_p11 = scmp.lt.s32.totalorder %s1653_s20, 3 }
  0x21   : > { %p366_p12 = pnand %p1287_p10, %p365_p11 }
  0x22   : > { %s2141_s22 = sand.u32 (!%p366_p12), 1, %s1645_s18   ;;  %s2151_s29 = smov (!%p366_p12), 126  }
  0x23   : > { %369 = sbr.rel (%p366_p12) target bundleno = 1645 (0x66d), region = 83  ;;  %s1788_s24 = sshll.u32 (!%p366_p12), %s2141_s22, 5 }
  0x24   : > { %s374_s25 = scalar_lea.vmem (!%p366_p12), [#allocation2], %s1788_s24  ;;  %s1656_s30 = smov (!%p366_p12), 125  }
  0x25   : > { %s2149_s12 = smov (!%p366_p12), 127   ;;  %s2145_s13 = smov (!%p366_p12), 1  }
  0x26   : > { %s2143_s14 = smov (!%p366_p12), 2   ;;  %s2147_s15 = smov (!%p366_p12), 3  }
  0x27   : > { %s2173_s16 = smov (!%p366_p12), 126   ;;  %s2174_s22 = sadd.s32 (!%p366_p12), 4294967295, %s1653_s20  }
  0x28   : > { %v1791_v4 = vld [vmem:[%s374_s25] sm:$0xff]  ;;  %v1793_v5 = vld [vmem:[%s374_s25 + $0x8] sm:$0xff]  ;;  %v1795_v6 = vld [vmem:[%s374_s25 + $0x10] sm:$0xff]  ;;  %v1661_v12 = vmov 0   ;;  %v418_v17 = vlaneseq  ;;  %vm540_vm0 = vcmask 1031168   ;;  %vm566_vm1 = vcmask 1022976  }
  0x29   : > { %v1461_v7 = vpack.i.bf16 %v1793_v5, %v1791_v4  ;;  %v1799_v8 = vld [vmem:[%s374_s25 + $0x18] sm:$0xff]  ;;  %v1486_v10 = vpack.i.bf16 %v1795_v6, %v1791_v4  ;;  %625 = vmatprep.mubr.bf16.mxu0 %v1661_v12  ;;  %1512 = vset.pattern.permute.xlu1 %v1661_v12  ;;  %v637_v13 = vld [vmem:[%s2131_s2 + $0x8] sm:$0xff]  ;;  %v636_v14 = vld [vmem:[%s2131_s2] sm:$0xff]  ;;  %vm514_vm3 = vcmask 1039360   ;;  %vm488_vm8 = vcmask 7168   ;;  %s410_s25 = scalar_lea.vmem [#allocation3], %s1788_s24 }
  0x2a   : > { %v1466_v9 = vpack.i.bf16 %v1799_v8, %v1795_v6  ;;  %v1481_v11 = vpack.i.bf16 %v1799_v8, %v1793_v5  ;;  %1511 = vset.pattern.permute.xlu0 %v1661_v12  ;;  %864 = vmatprep.mubr.bf16.mxu1 %v1661_v12  ;;  %v652_v15 = vld [vmem:[%s2132_s3] sm:$0xff]  ;;  %v653_v16 = vld [vmem:[%s2132_s3 + $0x8] sm:$0xff]  ;;  %v1831_v20 = vand.u32 127, %v418_v17  ;;  %v505_v2 = vpack.c.bf16 %v1799_v8, %v1793_v5  ;;  %s1213_s21 = sshll.u32 %s410_s25, 4  ;;  %s2077_s21 = int_to_ptr.vmem [resolvable:$true] %s1213_s21 }
  0x2b   : > { %1462 = vrot.lane.b32.xlu1 %v1461_v7, %s2151_s29  ;;  %1452 = vrot.lane.b32.xlu0 %v1461_v7, %s1656_s30  ;;  %vm462_vm10 = vcmask 15360   ;;  %vm436_vm13 = vcmask 23552  }
  0x2c   : > { %vm577_vm2 = vcmp.lt.s32.totalorder %v1831_v20, 125  ;;  %vm551_vm4 = vcmp.lt.s32.totalorder %v1831_v20, 126  ;;  %vm525_vm7 = vcmp.lt.s32.totalorder %v1831_v20, 127  ;;  %vm497_vm11 = vcmp.ge.s32.totalorder %v1831_v20, 1 }
  0x2d   : > { %vm1839_vm5 = vmpackc.low %vm577_vm2, %vm577_vm2  ;;  %vm471_vm14 = vcmp.ge.s32.totalorder %v1831_v20, 2  ;;  %vm445_vm2 = vcmp.ge.s32.totalorder %v1831_v20, 3  ;;  %v1575_v20 = vld [vmem:[%s2130_s1] sm:$0xff]  }
  0x2e   : > { %vm1850_vm6 = vmpackc.low %vm551_vm4, %vm551_vm4 }
  0x2f   : > { %1467 = vrot.lane.b32.xlu1 %v1466_v9, %s2151_s29  ;;  %1457 = vrot.lane.b32.xlu0 %v1466_v9, %s1656_s30  ;;  %vm1865_vm9 = vmpackc.low %vm525_vm7, %vm525_vm7  ;;  %vm589_vm7 = vcmask 916480  }
  0x30   : > { %vm1886_vm12 = vmpackc.low %vm497_vm11, %vm497_vm11 }
  0x31   : > { %vm1897_vm15 = vmpackc.low %vm471_vm14, %vm471_vm14 }
  0x32   : > { %vm1908_vm4 = vmpackc.low %vm445_vm2, %vm445_vm2 }
  0x33   : > { %1477 = vrot.lane.b32.xlu1 %v1466_v9, %s2149_s12  ;;  %1472 = vrot.lane.b32.xlu0 %v1461_v7, %s2149_s12  ;;  %s2169_s12 = smov 127  }
  0x37   : > { %1487 = vrot.lane.b32.xlu1 %v1486_v10, %s2145_s13  ;;  %1482 = vrot.lane.b32.xlu0 %v1481_v11, %s2145_s13  ;;  %s2170_s13 = smov 1  }
  0x3b   : > { %1497 = vrot.lane.b32.xlu1 %v1486_v10, %s2143_s14  ;;  %1492 = vrot.lane.b32.xlu0 %v1481_v11, %s2143_s14  ;;  %s2171_s14 = smov 2  }
  0x3f   : > { %1507 = vrot.lane.b32.xlu1 %v1486_v10, %s2147_s15  ;;  %1502 = vrot.lane.b32.xlu0 %v1481_v11, %s2147_s15  ;;  %s2172_s15 = smov 3  }
  0x43   : > { %645 = vperm.xlu1 %1512, %v637_v13   ;;  %640 = vperm.xlu0 %1511, %v636_v14   ;;  %v504_v14 = vpack.c.bf16 %v1795_v6, %v1791_v4 }
  0x47   : > { %656 = vperm.xlu1 %1512, %v652_v15   ;;  %661 = vperm.xlu0 %1511, %v653_v16  }
  0x9d   : > { %v1463_v18 = vpop.permute.xlu1 %1462  ;;  %v1453_v19 = vpop.permute.xlu0 %1452 }
  0x9e   : > { %v1465_v21 = vunpack.i.h.bf16 %v1463_v18  ;;  %v1464_v22 = vunpack.i.l.bf16 %v1463_v18  ;;  %v1455_v23 = vunpack.i.h.bf16 %v1453_v19  ;;  %v1454_v24 = vunpack.i.l.bf16 %v1453_v19 }
  0xa0   : > { %v549_v31 = vsel %vm540_vm0, %v1465_v21, %v1464_v22  ;;  %v575_v32 = vsel %vm566_vm1, %v1455_v23, %v1454_v24  ;;  %v567_v36 = vsel %vm566_vm1, %v1454_v24, %v1455_v23  ;;  %v541_v38 = vsel %vm540_vm0, %v1464_v22, %v1465_v21  ;;  %v1576_v22 = vld [vmem:[%s2133_s4] sm:$0xff]  }
  0xa1   : > { %v1468_v25 = vpop.permute.xlu1 %1467  ;;  %v1458_v26 = vpop.permute.xlu0 %1457 }
  0xa2   : > { %v1470_v27 = vunpack.i.h.bf16 %v1468_v25  ;;  %v1469_v28 = vunpack.i.l.bf16 %v1468_v25  ;;  %v1460_v29 = vunpack.i.h.bf16 %v1458_v26  ;;  %v1459_v30 = vunpack.i.l.bf16 %v1458_v26 }
  0xa4   : > { %v550_v33 = vsel %vm540_vm0, %v1470_v27, %v1469_v28  ;;  %v576_v34 = vsel %vm566_vm1, %v1460_v29, %v1459_v30  ;;  %v568_v37 = vsel %vm566_vm1, %v1459_v30, %v1460_v29  ;;  %v542_v39 = vsel %vm540_vm0, %v1469_v28, %v1470_v27 }
  0xa5   : > { %v1292_v40 = vpack.c.bf16 %v576_v34, %v575_v32  ;;  %v1295_v41 = vpack.c.bf16 %v568_v37, %v567_v36  ;;  %v1478_v42 = vpop.permute.xlu1 %1477  ;;  %v1473_v43 = vpop.permute.xlu0 %1472  ;;  %v1298_v49 = vpack.c.bf16 %v550_v33, %v549_v31  ;;  %v1301_v52 = vpack.c.bf16 %v542_v39, %v541_v38 }
  0xa6   : > { %v1480_v44 = vunpack.i.h.bf16 %v1478_v42  ;;  %v1479_v45 = vunpack.i.l.bf16 %v1478_v42  ;;  %v1475_v46 = vunpack.i.h.bf16 %v1473_v43  ;;  %v1474_v47 = vunpack.i.l.bf16 %v1473_v43 }
  0xa7   : > { %1293 = vmatprep.subr.msk.bf16.mxu0 %vm1839_vm5, %v1292_v40 }
  0xa8   : > { %1296 = vmatpush1.bf16.msk.msra.mxu0 %vm1839_vm5, %v1295_v41  ;;  %v524_v50 = vsel %vm514_vm3, %v1480_v44, %v1479_v45  ;;  %v523_v51 = vsel %vm514_vm3, %v1475_v46, %v1474_v47  ;;  %v516_v53 = vsel %vm514_vm3, %v1479_v45, %v1480_v44  ;;  %v515_v54 = vsel %vm514_vm3, %v1474_v47, %v1475_v46 }
  0xa9   : > { %v1304_v55 = vpack.c.bf16 %v524_v50, %v523_v51  ;;  %1299 = vmatprep.subr.msk.bf16.mxu0 %vm1850_vm6, %v1298_v49  ;;  %v1488_v56 = vpop.permute.xlu1 %1487  ;;  %v1483_v57 = vpop.permute.xlu0 %1482  ;;  %v1307_v63 = vpack.c.bf16 %v516_v53, %v515_v54 }
  0xaa   : > { %v1490_v59 = vunpack.i.h.bf16 %v1488_v56  ;;  %v1489_v60 = vunpack.i.l.bf16 %v1488_v56  ;;  %v1485_v61 = vunpack.i.h.bf16 %v1483_v57  ;;  %v1484_v62 = vunpack.i.l.bf16 %v1483_v57 }
  0xac   : > { %1302 = vmatpush1.bf16.msk.msra.mxu0 %vm1850_vm6, %v1301_v52  ;;  %v490_v0 = vsel %vm488_vm8, %v1490_v59, %v1485_v61  ;;  %v489_v1 = vsel %vm488_vm8, %v1489_v60, %v1484_v62  ;;  %v496_v13 = vsel %vm488_vm8, %v1485_v61, %v1490_v59  ;;  %v495_v15 = vsel %vm488_vm8, %v1484_v62, %v1489_v60 }
  0xad   : > { %1305 = vmatprep.subr.msk.bf16.mxu0 %vm1865_vm9, %v1304_v55  ;;  %v1498_v3 = vpop.permute.xlu1 %1497  ;;  %v1493_v7 = vpop.permute.xlu0 %1492  ;;  %v1310_v16 = vpack.c.bf16 %v490_v0, %v489_v1  ;;  %v1313_v27 = vpack.c.bf16 %v496_v13, %v495_v15 }
  0xae   : > { %v1500_v9 = vunpack.i.h.bf16 %v1498_v3  ;;  %v1499_v10 = vunpack.i.l.bf16 %v1498_v3  ;;  %v1495_v11 = vunpack.i.h.bf16 %v1493_v7  ;;  %v1494_v12 = vunpack.i.l.bf16 %v1493_v7 }
  0xb0   : > { %1308 = vmatpush1.bf16.msk.msra.mxu0 %vm1865_vm9, %v1307_v63  ;;  %v464_v17 = vsel %vm462_vm10, %v1500_v9, %v1495_v11  ;;  %v463_v18 = vsel %vm462_vm10, %v1499_v10, %v1494_v12  ;;  %v470_v28 = vsel %vm462_vm10, %v1495_v11, %v1500_v9  ;;  %v469_v29 = vsel %vm462_vm10, %v1494_v12, %v1499_v10  ;;  %v876_v9 = vld [vmem:[%s2134_s5 + $0x8] sm:$0xff]  ;;  %v875_v11 = vld [vmem:[%s2134_s5] sm:$0xff] }
  0xb1   : > { %601 = vmatprep.subr.bf16.mxu0 %v505_v2  ;;  %v1508_v19 = vpop.permute.xlu1 %1507  ;;  %v1503_v21 = vpop.permute.xlu0 %1502  ;;  %v1316_v30 = vpack.c.bf16 %v464_v17, %v463_v18  ;;  %v1319_v34 = vpack.c.bf16 %v470_v28, %v469_v29  ;;  %v892_v10 = vld [vmem:[%s2135_s6 + $0x8] sm:$0xff]  ;;  %v891_v12 = vld [vmem:[%s2135_s6] sm:$0xff] }
  0xb2   : > { %v1510_v23 = vunpack.i.h.bf16 %v1508_v19  ;;  %v1509_v24 = vunpack.i.l.bf16 %v1508_v19  ;;  %v1505_v25 = vunpack.i.h.bf16 %v1503_v21  ;;  %v1504_v26 = vunpack.i.l.bf16 %v1503_v21 }
  0xb4   : > { %602 = vmatpush1.bf16.msra.mxu0 %v504_v14  ;;  %v438_v31 = vsel %vm436_vm13, %v1510_v23, %v1505_v25  ;;  %v437_v32 = vsel %vm436_vm13, %v1509_v24, %v1504_v26  ;;  %v444_v36 = vsel %vm436_vm13, %v1505_v25, %v1510_v23  ;;  %v443_v37 = vsel %vm436_vm13, %v1504_v26, %v1509_v24 }
  0xb5   : > { %1311 = vmatprep.subr.msk.bf16.mxu0 %vm1886_vm12, %v1310_v16  ;;  %v1322_v38 = vpack.c.bf16 %v438_v31, %v437_v32  ;;  %v1325_v40 = vpack.c.bf16 %v444_v36, %v443_v37 }
  0xb8   : > { %1314 = vmatpush1.bf16.msk.msra.mxu0 %vm1886_vm12, %v1313_v27 }
  0xb9   : > { %1317 = vmatprep.subr.msk.bf16.mxu0 %vm1897_vm15, %v1316_v30 }
  0xbc   : > { %1320 = vmatpush1.bf16.msk.msra.mxu0 %vm1897_vm15, %v1319_v34 }
  0xbd   : > { %1323 = vmatprep.subr.msk.bf16.mxu0 %vm1908_vm4, %v1322_v38 }
  0xbe   : > { %v646_v41 = vpop.permute.xlu1 %645  ;;  %v641_v42 = vpop.permute.xlu0 %640 }
  0xc0   : > { %1326 = vmatpush1.bf16.msk.msra.mxu0 %vm1908_vm4, %v1325_v40 }
  0xc2   : > { %v657_v44 = vpop.permute.xlu1 %656  ;;  %v662_v53 = vpop.permute.xlu0 %661 }
  0xc3   : > { %1327 = vmatmul.mubr.msk.bf16.vlgmr.msra.gmra.mxu0 %vm589_vm7, %v1575_v20 }
 0x183   : > { %v627_v43 = vpop.f32.mrf.mxu0 }
 0x184   : > { %v648_v45 = vmul.f32 %v641_v42, %v627_v43 }
 0x185   : > { %v629_v46 = vpop.f32.mrf.mxu0 }
 0x186   : > { %v664_v47 = vadd.f32 %v657_v44, %v648_v45  ;;  %v649_v49 = vmul.f32 %v641_v42, %v629_v46 }
 0x187   : > { %v631_v50 = vpop.f32.mrf.mxu0 }
 0x188   : > { %v665_v51 = vadd.f32 %v657_v44, %v649_v49  ;;  %v650_v52 = vmul.f32 %v646_v41, %v631_v50  ;;  %v1922_v55 = vmax.f32 %v664_v47, 0.0 }
 0x189   : > { %v633_v54 = vpop.f32.mrf.mxu0 }
 0x18a   : > { %v1924_v56 = vmax.f32 %v665_v51, 0.0  ;;  %v666_v57 = vadd.f32 %v662_v53, %v650_v52  ;;  %v651_v59 = vmul.f32 %v646_v41, %v633_v54 }
 0x18c   : > { %v1926_v60 = vmax.f32 %v666_v57, 0.0  ;;  %v667_v61 = vadd.f32 %v662_v53, %v651_v59  ;;  %v1513_v62 = vpack.i.bf16 %v1924_v56, %v1922_v55 }
 0x18e   : > { %v1930_v63 = vmax.f32 %v667_v61, 0.0  ;;  %1514 = vrot.lane.b32.xlu1 %v1513_v62, %s1656_s30  ;;  %v750_v0 = vpack.c.bf16 %v1926_v60, %v1922_v55  ;;  %v1543_v7 = vpack.i.bf16 %v1926_v60, %v1922_v55 }
 0x190   : > { %v1528_v1 = vpack.i.bf16 %v1930_v63, %v1926_v60  ;;  %v751_v2 = vpack.c.bf16 %v1930_v63, %v1924_v56  ;;  %v1553_v3 = vpack.i.bf16 %v1930_v63, %v1924_v56 }
 0x192   : > { %1519 = vrot.lane.b32.xlu1 %v1513_v62, %s2151_s29  ;;  %1529 = vrot.lane.b32.xlu0 %v1528_v1, %s1656_s30  ;;  %s1593_s30 = scalar_lea.vmem %s2077_s21, 512 }
 0x193   : > { %p1594_p13 = scmp.ne.s32.totalorder %s2077_s21, %s1593_s30 }
 0x195   : > { %p1595_p0 = pnand %p1594_p13, %p1767_p6 }
 0x196   : > { %1524 = vrot.lane.b32.xlu1 %v1513_v62, %s2169_s12  ;;  %1534 = vrot.lane.b32.xlu0 %v1528_v1, %s2151_s29 }
 0x197   : > { %p1596_p1 = pneg %p1595_p0 }
 0x19a   : > { %1554 = vrot.lane.b32.xlu1 %v1553_v3, %s2170_s13  ;;  %1539 = vrot.lane.b32.xlu0 %v1528_v1, %s2169_s12  ;;  %s1380_s12 = sshll.u32 %s2174_s22, 8 }
 0x19b   : > { %s2082_s29 = scalar_lea.hbm %s2140_s11, %s1380_s12 }
 0x19e   : > { %1559 = vrot.lane.b32.xlu1 %v1553_v3, %s2171_s14  ;;  %1544 = vrot.lane.b32.xlu0 %v1543_v7, %s2170_s13 }
 0x1a2   : > { %1564 = vrot.lane.b32.xlu1 %v1553_v3, %s2172_s15  ;;  %1549 = vrot.lane.b32.xlu0 %v1543_v7, %s2171_s14  ;;  %s2175_s14 = sand.u32 1, %s1645_s18  }
 0x1a6   : > { %884 = vperm.xlu1 %1512, %v876_v9   ;;  %1569 = vrot.lane.b32.xlu0 %v1543_v7, %s2172_s15  ;;  %s2088_s15 = scalar_lea.sflag [#allocation4], %s2175_s14 }
 0x1aa   : > { %900 = vperm.xlu1 %1512, %v892_v10   ;;  %879 = vperm.xlu0 %1511, %v875_v11  }
 0x1ae   : > { %895 = vperm.xlu0 %1511, %v891_v12  }
 0x200   : > { %v1515_v13 = vpop.permute.xlu1 %1514 }
 0x201   : > { %v1517_v14 = vunpack.i.h.bf16 %v1515_v13  ;;  %v1516_v15 = vunpack.i.l.bf16 %v1515_v13 }
 0x203   : > { %v816_v24 = vsel %vm566_vm1, %v1517_v14, %v1516_v15  ;;  %v808_v26 = vsel %vm566_vm1, %v1516_v15, %v1517_v14 }
 0x204   : > { %v1520_v16 = vpop.permute.xlu1 %1519  ;;  %v1530_v17 = vpop.permute.xlu0 %1529 }
 0x205   : > { %v1532_v18 = vunpack.i.h.bf16 %v1530_v17  ;;  %v1531_v19 = vunpack.i.l.bf16 %v1530_v17  ;;  %v1522_v21 = vunpack.i.h.bf16 %v1520_v16  ;;  %v1521_v23 = vunpack.i.l.bf16 %v1520_v16 }
 0x207   : > { %v817_v25 = vsel %vm566_vm1, %v1532_v18, %v1531_v19  ;;  %v809_v27 = vsel %vm566_vm1, %v1531_v19, %v1532_v18  ;;  %v784_v36 = vsel %vm540_vm0, %v1521_v23, %v1522_v21  ;;  %v792_v37 = vsel %vm540_vm0, %v1522_v21, %v1521_v23 }
 0x208   : > { %v1525_v28 = vpop.permute.xlu1 %1524  ;;  %v1535_v29 = vpop.permute.xlu0 %1534  ;;  %v1330_v30 = vpack.c.bf16 %v817_v25, %v816_v24  ;;  %v1333_v31 = vpack.c.bf16 %v809_v27, %v808_v26  ;;  %vm941_vm1 = vcmask 130048  }
 0x209   : > { %v1537_v32 = vunpack.i.h.bf16 %v1535_v29  ;;  %v1536_v34 = vunpack.i.l.bf16 %v1535_v29  ;;  %v1527_v38 = vunpack.i.h.bf16 %v1525_v28  ;;  %v1526_v40 = vunpack.i.l.bf16 %v1525_v28 }
 0x20a   : > { %1331 = vmatprep.subr.msk.bf16.mxu1 %vm1839_vm5, %v1330_v30 }
 0x20b   : > { %v785_v20 = vsel %vm540_vm0, %v1536_v34, %v1537_v32  ;;  %v793_v41 = vsel %vm540_vm0, %v1537_v32, %v1536_v34  ;;  %1334 = vmatpush1.bf16.msk.msra.mxu1 %vm1839_vm5, %v1333_v31  ;;  %v760_v49 = vsel %vm514_vm3, %v1526_v40, %v1527_v38  ;;  %v768_v50 = vsel %vm514_vm3, %v1527_v38, %v1526_v40 }
 0x20c   : > { %v1336_v42 = vpack.c.bf16 %v793_v41, %v792_v37  ;;  %v1339_v43 = vpack.c.bf16 %v785_v20, %v784_v36  ;;  %v1555_v44 = vpop.permute.xlu1 %1554  ;;  %v1540_v45 = vpop.permute.xlu0 %1539  ;;  %vm1663_vm0 = vmmov 0  }
 0x20d   : > { %v1542_v46 = vunpack.i.h.bf16 %v1540_v45  ;;  %v1541_v47 = vunpack.i.l.bf16 %v1540_v45  ;;  %v1557_v59 = vunpack.i.h.bf16 %v1555_v44  ;;  %v1556_v61 = vunpack.i.l.bf16 %v1555_v44 }
 0x20e   : > { %1337 = vmatprep.subr.msk.bf16.mxu1 %vm1850_vm6, %v1336_v42 }
 0x20f   : > { %v761_v51 = vsel %vm514_vm3, %v1541_v47, %v1542_v46  ;;  %v769_v52 = vsel %vm514_vm3, %v1542_v46, %v1541_v47  ;;  %1340 = vmatpush1.bf16.msk.msra.mxu1 %vm1850_vm6, %v1339_v43  ;;  %v1662_v46 = vmov 0.0   ;;  %v1018_v47 = vld [vmem:[%s2139_s10] sm:$0xff]  ;;  %vm1036_vm3 = vcmask 1041408  }
 0x210   : > { %v1342_v35 = vpack.c.bf16 %v769_v52, %v768_v50  ;;  %v1345_v53 = vpack.c.bf16 %v761_v51, %v760_v49  ;;  %v1560_v54 = vpop.permute.xlu1 %1559  ;;  %v1545_v57 = vpop.permute.xlu0 %1544  ;;  %1387 = vmatprep.subr.mxu0 %v1662_v46  ;;  %1391 = vmatprep.mubr.msk.f32.mxu0 %vm1663_vm0, %v1662_v46  ;;  %v1019_v49 = vld [vmem:[%s2139_s10 + $0x8] sm:$0xff]  ;;  %v935_v50 = vld [vmem:[%s2137_s8] sm:$0x3] }
 0x211   : > { %v1547_v62 = vunpack.i.h.bf16 %v1545_v57  ;;  %v1546_v1 = vunpack.i.l.bf16 %v1545_v57  ;;  %v1562_v48 = vunpack.i.h.bf16 %v1560_v54  ;;  %v1561_v9 = vunpack.i.l.bf16 %v1560_v54 }
 0x212   : > { %1343 = vmatprep.subr.msk.bf16.mxu1 %vm1865_vm9, %v1342_v35 }
 0x213   : > { %v737_v3 = vsel %vm488_vm8, %v1547_v62, %v1557_v59  ;;  %v736_v7 = vsel %vm488_vm8, %v1546_v1, %v1556_v61  ;;  %1346 = vmatpush1.bf16.msk.msra.mxu1 %vm1865_vm9, %v1345_v53  ;;  %v743_v11 = vsel %vm488_vm8, %v1557_v59, %v1547_v62  ;;  %v742_v12 = vsel %vm488_vm8, %v1556_v61, %v1546_v1 }
 0x214   : > { %v1550_v10 = vpop.permute.xlu0 %1549  ;;  %840 = vmatprep.subr.bf16.mxu1 %v751_v2  ;;  %v1348_v15 = vpack.c.bf16 %v737_v3, %v736_v7  ;;  %v1565_v16 = vpop.permute.xlu1 %1564  ;;  %v1351_v18 = vpack.c.bf16 %v743_v11, %v742_v12 }
 0x215   : > { %v1552_v13 = vunpack.i.h.bf16 %v1550_v10  ;;  %v1551_v14 = vunpack.i.l.bf16 %v1550_v10  ;;  %v1567_v56 = vunpack.i.h.bf16 %v1565_v16  ;;  %v1566_v63 = vunpack.i.l.bf16 %v1565_v16 }
 0x217   : > { %v713_v17 = vsel %vm462_vm10, %v1552_v13, %v1562_v48  ;;  %v712_v58 = vsel %vm462_vm10, %v1551_v14, %v1561_v9  ;;  %841 = vmatpush1.bf16.msra.mxu1 %v750_v0  ;;  %v719_v23 = vsel %vm462_vm10, %v1562_v48, %v1552_v13  ;;  %v718_v24 = vsel %vm462_vm10, %v1561_v9, %v1551_v14  ;;  %v934_v13 = vld [vmem:[%s2136_s7] sm:$0x3] }
 0x218   : > { %v1570_v19 = vpop.permute.xlu0 %1569  ;;  %1349 = vmatprep.subr.msk.bf16.mxu1 %vm1886_vm12, %v1348_v15  ;;  %v1354_v25 = vpack.c.bf16 %v713_v17, %v712_v58  ;;  %v1357_v55 = vpack.c.bf16 %v719_v23, %v718_v24  ;;  %v1016_v15 = vld [vmem:[%s2138_s9] sm:$0xff] }
 0x219   : > { %v1572_v2 = vunpack.i.h.bf16 %v1570_v19  ;;  %v1571_v21 = vunpack.i.l.bf16 %v1570_v19 }
 0x21b   : > { %v689_v26 = vsel %vm436_vm13, %v1572_v2, %v1567_v56  ;;  %v688_v27 = vsel %vm436_vm13, %v1571_v21, %v1566_v63  ;;  %1352 = vmatpush1.bf16.msk.msra.mxu1 %vm1886_vm12, %v1351_v18  ;;  %v695_v60 = vsel %vm436_vm13, %v1567_v56, %v1572_v2  ;;  %v694_v0 = vsel %vm436_vm13, %v1566_v63, %v1571_v21  ;;  %v1017_v56 = vld [vmem:[%s2138_s9 + $0x8] sm:$0xff] }
 0x21c   : > { %1355 = vmatprep.subr.msk.bf16.mxu1 %vm1897_vm15, %v1354_v25  ;;  %v1360_v28 = vpack.c.bf16 %v689_v26, %v688_v27  ;;  %v1363_v29 = vpack.c.bf16 %v695_v60, %v694_v0 }
 0x21f   : > { %1358 = vmatpush1.bf16.msk.msra.mxu1 %vm1897_vm15, %v1357_v55 }
 0x220   : > { %1361 = vmatprep.subr.msk.bf16.mxu1 %vm1908_vm4, %v1360_v28 }
 0x221   : > { %v885_v32 = vpop.permute.xlu1 %884 }
 0x223   : > { %1364 = vmatpush1.bf16.msk.msra.mxu1 %vm1908_vm4, %v1363_v29 }
 0x225   : > { %v880_v30 = vpop.permute.xlu0 %879  ;;  %v901_v43 = vpop.permute.xlu1 %900 }
 0x226   : > { %1365 = vmatmul.mubr.msk.bf16.vlgmr.msra.gmra.mxu1 %vm589_vm7, %v1576_v22 }
 0x227   : > { %1396 = vmatprep.mubr.msk.f32.mxu1 %vm462_vm10, %v1016_v15 }
 0x229   : > { %v896_v36 = vpop.permute.xlu0 %895 }
 0x2e6   : > { %v866_v31 = vpop.f32.mrf.mxu1 }
 0x2e7   : > { %v887_v34 = vmul.f32 %v880_v30, %v866_v31 }
 0x2e8   : > { %v868_v33 = vpop.f32.mrf.mxu1 }
 0x2e9   : > { %v2024_v37 = vadd.f32 %v896_v36, %v887_v34  ;;  %v888_v38 = vmul.f32 %v880_v30, %v868_v33 }
 0x2ea   : > { %v870_v40 = vpop.f32.mrf.mxu1 }
 0x2eb   : > { %v2026_v20 = vadd.f32 %v896_v36, %v888_v38  ;;  %v889_v41 = vmul.f32 %v885_v32, %v870_v40  ;;  %907 = vadd.xlane.f32.xlu0 %v2024_v37  ;;  %v1664_v36 = vmov 1  }
 0x2ec   : > { %v872_v42 = vpop.f32.mrf.mxu1 }
 0x2ed   : > { %v890_v39 = vmul.f32 %v885_v32, %v872_v42  ;;  %914 = vadd.xlane.f32.xlu1 %v2026_v20  ;;  %v2030_v44 = vadd.f32 %v901_v43, %v889_v41 }
 0x2ef   : > { %v2032_v45 = vadd.f32 %v901_v43, %v890_v39 }
 0x2f1   : > { %909 = vadd.xlane.f32.xlu1 %v2030_v44  ;;  %916 = vadd.xlane.f32.xlu0 %v2032_v45 }
 0x2f5   : > { %926 = vmax.xlane.f32.xlu1 %v2032_v45  ;;  %922 = vmax.xlane.f32.xlu0 %v2030_v44 }
 0x2f9   : > { %924 = vmax.xlane.f32.xlu1 %v2026_v20  ;;  %920 = vmax.xlane.f32.xlu0 %v2024_v37 }
 0x30a   : > { %1022 = vperm.xlu1 %1512, %v1018_v47  }
 0x30e   : > { %1027 = vperm.xlu1 %1512, %v1019_v49  }
 0x30f   : > { %938 = vperm.xlu0 %1511, %v935_v50  }
 0x374   : > { %v908_v51 = vpop.xlane.xlu0 %907 }
 0x375   : > { %v912_v7 = vmul.f32 0.0078125, %v908_v51 }
 0x376   : > { %v915_v52 = vpop.xlane.xlu1 %914 }
 0x377   : > { %v918_v61 = vmul.f32 0.0078125, %v915_v52 }
 0x379   : > { %v928_v10 = vsel %vm488_vm8, %v912_v7, %v918_v61 }
 0x37a   : > { %v910_v35 = vpop.xlane.xlu1 %909  ;;  %v917_v53 = vpop.xlane.xlu0 %916 }
 0x37b   : > { %v913_v54 = vmul.f32 0.0078125, %v910_v35  ;;  %v919_v57 = vmul.f32 0.0078125, %v917_v53 }
 0x37d   : > { %v929_v59 = vsel %vm488_vm8, %v913_v54, %v919_v57 }
 0x37e   : > { %v927_v62 = vpop.xlane.xlu1 %926  ;;  %v923_v1 = vpop.xlane.xlu0 %922 }
 0x37f   : > { %v931_v3 = vsel %vm462_vm10, %v929_v59, %v923_v1 }
 0x380   : > { %v933_v48 = vsel %vm436_vm13, %v931_v3, %v927_v62 }
 0x381   : > { %1388 = vmatpush3.msra.mxu0 %v933_v48 }
 0x382   : > { %v925_v9 = vpop.xlane.xlu1 %924  ;;  %v921_v11 = vpop.xlane.xlu0 %920  ;;  %1389 = vmatprep.subr.mxu0 %v1662_v46 }
 0x383   : > { %v930_v12 = vsel %vm462_vm10, %v928_v10, %v921_v11 }
 0x384   : > { %v932_v14 = vsel %vm436_vm13, %v930_v12, %v925_v9 }
 0x385   : > { %1390 = vmatpush3.msra.mxu0 %v932_v14 }
 0x386   : > { %1392 = vmatmul.mubr.msk.f32.vlgmr.msra.gmra.mxu0 %vm941_vm1, %v934_v13  ;;  %v1023_v63 = vpop.permute.xlu1 %1022 }
 0x38a   : > { %v939_v16 = vpop.permute.xlu0 %938  ;;  %v1028_v2 = vpop.permute.xlu1 %1027 }
 0x446   : > { %v1011_v17 = vpop.f32.mrf.mxu0 }
 0x447   : > { %v1012_v58 = vadd.f32 %v1011_v17, %v939_v16 }
 0x448   : > { %v1393_v18 = vpop.f32.mrf.mxu0 }
 0x449   : > { %v1015_v19 = vmax.f32 %v1012_v58, 0.0 }
 0x44b   : > { %1394 = vmatprep.subr.msk.mxu1 %vm1036_vm3, %v1015_v19 }
 0x44c   : > { %1395 = vmatpush3.msk.msra.mxu1 %vm1036_vm3, %v1015_v19 }
 0x44d   : > { %1397 = vmatmul.mubr.msk.f32.vlgmr.msra.gmra.mxu1 %vm462_vm10, %v1017_v56 }
 0x50d   : > { %v1398_v21 = vpop.f32.mrf.mxu1 }
 0x50e   : > { %v1112_v23 = vadd.f32 %v1398_v21, %v1028_v2 }
 0x50f   : > { %v1106_v24 = vpop.f32.mrf.mxu1 }
 0x510   : > { %v1107_v25 = vadd.f32 %v1106_v24, %v1023_v63  ;;  %1119 = vrot.lane.b32.xlu1 %v1112_v23, %s2173_s16 }
 0x512   : > { %1117 = vrot.lane.b32.xlu0 %v1107_v25, %s2173_s16  ;;  %s1665_s16 = smov [#allocation3]  }
 0x513   : > { %s1597_s22 = sshll.u32 %s1665_s16, 4  ;;  %s1598_s22 = int_to_ptr.vmem [resolvable:$false] %s1597_s22 }
 0x514   : > { %s1599_s24 = scalar_lea.vmem %s1598_s22, 1024  ;;  %p1600_p2 = scmp.lt.s32.totalorder %s2077_s21, %s1598_s22 }
 0x515   : > { %p1601_p3 = scmp.lt.s32.totalorder %s1599_s24, %s1593_s30 }
 0x517   : > { %p1602_p4 = por %p1601_p3, %p1600_p2 }
 0x519   : > { %p1603_p5 = pnand %p1602_p4, %p1596_p1 }
 0x582   : > { %v1120_v26 = vpop.permute.xlu1 %1119 }
 0x583   : > { %v1124_v27 = vadd.f32 %v1120_v26, %v1112_v23 }
 0x584   : > { %v1118_v55 = vpop.permute.xlu0 %1117 }
 0x585   : > { %v1371_v60 = vmul.f32 -1.442695, %v1124_v27  ;;  %v1123_v0 = vadd.f32 %v1118_v55, %v1107_v25 }
 0x587   : > { %1577 = vpow2.f32 %v1371_v60  ;;  %v1370_v28 = vmul.f32 -1.442695, %v1123_v0 }
 0x589   : > { %1579 = vpow2.f32 %v1370_v28 }
 0x594   : > { %v1578_v29 = vpop.eup %1577 }
 0x595   : > { %v1132_v22 = vadd.f32 1.0, %v1578_v29 }
 0x596   : > { %v1580_v30 = vpop.eup %1579 }
 0x597   : > { %1581 = vrcp.f32 %v1132_v22  ;;  %v1131_v31 = vadd.f32 1.0, %v1580_v30 }
 0x599   : > { %1583 = vrcp.f32 %v1131_v31 }
 0x5a4   : > { %v1582_v32 = vpop.eup %1581 }
 0x5a5   : > { %1144 = vperm.xlu1 %1512, %v1582_v32  }
 0x5a6   : > { %v1584_v34 = vpop.eup %1583 }
 0x5a7   : > { %1139 = vperm.xlu0 %1511, %v1584_v34  }
 0x5a9   : > { %1574 = vset.pattern.permute.xlu1 %v1664_v36 }
 0x5aa   : > { %1154 = vperm.xlu1 %1574, %v1582_v32  }
 0x5ab   : > { %1573 = vset.pattern.permute.xlu0 %v1664_v36 }
 0x5ac   : > { %1150 = vperm.xlu0 %1573, %v1584_v34  }
 0x620   : > { %v1145_v33 = vpop.permute.xlu1 %1144 }
 0x621   : > { %v1148_v40 = vmul.f32 %v1145_v33, %v2030_v44 }
 0x622   : > { %v1140_v38 = vpop.permute.xlu0 %1139 }
 0x623   : > { %v1147_v41 = vmul.f32 %v1140_v38, %v2024_v37 }
 0x625   : > { %v1159_v42 = vmax.f32 %v1147_v41, %v1148_v40  ;;  %v1155_v39 = vpop.permute.xlu1 %1154 }
 0x626   : > { %v1158_v47 = vmul.f32 %v1155_v39, %v2032_v45 }
 0x627   : > { %v1160_v43 = vrot.slane %v1159_v42, 4  ;;  %v1151_v46 = vpop.permute.xlu0 %1150 }
 0x628   : > { %v1157_v49 = vmul.f32 %v1151_v46, %v2026_v20 }
 0x629   : > { %v1161_v50 = vmax.f32 %v1159_v42, %v1160_v43 }
 0x62a   : > { %v1166_v51 = vmax.f32 %v1157_v49, %v1158_v47 }
 0x62b   : > { %v1162_v52 = vrot.slane %v1161_v50, 2 }
 0x62c   : > { %v1167_v35 = vrot.slane %v1166_v51, 4 }
 0x62d   : > { %v1163_v53 = vmax.f32 %v1161_v50, %v1162_v52 }
 0x62e   : > { %v1168_v54 = vmax.f32 %v1166_v51, %v1167_v35 }
 0x62f   : > { %v1164_v57 = vrot.slane %v1163_v53, 1 }
 0x630   : > { %v1169_v59 = vrot.slane %v1168_v54, 2 }
 0x631   : > { %v1165_v61 = vmax.f32 %v1163_v53, %v1164_v57 }
 0x632   : > { %v1170_v44 = vmax.f32 %v1168_v54, %v1169_v59 }
 0x633   : > { %v1372_v62 = vmul.f32 -1.442695, %v1165_v61 }
 0x634   : > { %v1171_v37 = vrot.slane %v1170_v44, 1 }
 0x635   : > { %1585 = vpow2.f32 %v1372_v62 }
 0x636   : > { %v1172_v1 = vmax.f32 %v1170_v44, %v1171_v37 }
 0x638   : > { %v1373_v3 = vmul.f32 -1.442695, %v1172_v1 }
 0x63a   : > { %1587 = vpow2.f32 %v1373_v3 }
 0x642   : > { %v1586_v45 = vpop.eup %1585 }
 0x643   : > { %v1179_v20 = vadd.f32 1.0, %v1586_v45 }
 0x645   : > { %1589 = vrcp.f32 %v1179_v20 }
 0x647   : > { %v1588_v7 = vpop.eup %1587 }
 0x648   : > { %v1180_v48 = vadd.f32 1.0, %v1588_v7 }
 0x64a   : > { %1591 = vrcp.f32 %v1180_v48 }
 0x652   : > { %v1590_v9 = vpop.eup %1589 }
 0x653   : > { %v1185_v10 = vadd.f32 1.0, %v1590_v9 }
 0x655   : > { %v1187_v11 = vmul.f32 %v1185_v10, %v1147_v41  ;;  %v1189_v12 = vmul.f32 %v1185_v10, %v1148_v40 }
 0x657   : > { %v1592_v13 = vpop.eup %1591  ;;  %v1191_v14 = vadd.f32 %v1187_v11, %v1791_v4  ;;  %v1193_v15 = vadd.f32 %v1189_v12, %v1795_v6 }
 0x658   : > { %v1186_v16 = vadd.f32 1.0, %v1592_v13 }
 0x659   : > { %1195 = vst [vmem:[%s410_s25] sm:$0xff] %v1191_v14  ;;  %1197 = vst [vmem:[%s410_s25 + $0x10] sm:$0xff] %v1193_v15 }
 0x65a   : > { %v1188_v17 = vmul.f32 %v1186_v16, %v1157_v49  ;;  %v1190_v58 = vmul.f32 %v1186_v16, %v1158_v47 }
 0x65c   : > { %v1192_v4 = vadd.f32 %v1188_v17, %v1793_v5  ;;  %v1194_v6 = vadd.f32 %v1190_v58, %v1799_v8 }
 0x65e   : > { %1196 = vst [vmem:[%s410_s25 + $0x8] sm:$0xff] %v1192_v4  ;;  %1198 = vst [vmem:[%s410_s25 + $0x18] sm:$0xff] %v1194_v6 }
 0x65f   : > { %1606 = shalt.err (!%p1603_p5)
}
 0x660   : > { %s1607_s25 = scalar_lea.hbm %s2082_s29, 512  ;;  %s1611_s14 = scalar_lea.hbm %s2140_s11, 1024 }
 0x661   : > { %p1608_p7 = scmp.ne.s32.totalorder %s2082_s29, %s1607_s25  ;;  %p1612_p12 = scmp.lt.s32.totalorder %s2082_s29, %s2140_s11 }
 0x662   : > { %p1613_p13 = scmp.lt.s32.totalorder %s1611_s14, %s1607_s25 }
 0x663   : > { %p1609_p10 = pnand %p1608_p7, %p1767_p6 }
 0x664   : > { %p1614_p0 = por %p1613_p13, %p1612_p12 }
 0x665   : > { %p1610_p11 = pneg %p1609_p10 }
 0x667   : > { %p1615_p1 = pnand %p1614_p0, %p1610_p11 }
 0x669   : > { %1618 = shalt.err (!%p1615_p1)
}
 0x66a   : > { %s1666_s30 = smov 256   ;;  %s1667_s22 = smov 512  }
 0x66b   : > { %s1668_s24 = smov 16  }
 0x66c   : > { %1399 = dma.vmem_to_hbm [thread:$0]  (%p1767_p6), %s2077_s21, 512, %s2082_s29, %s2088_s15, %s1666_s30, %s1667_s22, %s1668_s24  }
 0x66d PF: > { %s1228_s12 = sand.u32 1, %s1641_s17   ;;  %p1402_p2 = pnand %p1283_p9, %p1771_p8 }
 0x66e   : > { %s1229_s0 = scalar_lea.sflag [#allocation4], %s1228_s12 }
 0x66f   : > { %p1403_p3 = pneg %p1402_p2 }
 0x671   : > { %1636 = dma.done.wait (%p1403_p3), %s1229_s0, 512  }
 0x672   : > { %1638 = vsyncadd (%p1403_p3), %s1229_s0, 4294966784  ;;  %p21_p4 = scmp.ge.s32.totalorder %s1752_s23, 4   ;;  %s2176_s17 = smov %s1645_s18 }
 0x673   : > { %s2177_s18 = smov %s1649_s19  ;;  %s2178_s19 = smov %s1765_s26 }
 0x674   : > { %s2179_s20 = smov %s1752_s23  ;;  %23 = sbr.rel (!%p21_p4) target bundleno = 5 (0x5), region = 127 }
 0x679   :  { %1234 = vsyncpa [#allocation4], 1 }
 0x67a   :  { %1236 = vsyncpa [#allocation4 + $0x1], 1 }

</bundles_post_ra>
